<compile_context>
chip_gen: v7x
topology: tpu7x:2x2x1
jax: 0.10.0
libtpu: 0.0.40
codegen_flags: <defaults>
</compile_context>

<pallas_src>
import jax
import jax.numpy as jnp
from jax.experimental import pallas as pl
from jax.experimental.pallas import tpu as pltpu


_LANE = 128
_SUBLANE = 8


def _round_up(x, m):
    return (x + m - 1) // m * m


def masked_mean_kernel(nbr_ref, mask_ref, out_ref):
    # nbr_ref:  (tm, N, D) tile of neighbor vectors
    # mask_ref: (tm, N)    tile of masks (trailing broadcast-1 squeezed in wrapper)
    # out_ref:  (tm, D)    mean over the neighbor axis of (neighbor * mask)
    n = nbr_ref.shape[1]
    # Fold the 1/N mean scale into the narrow (tm, N) mask operand instead of the
    # wide (tm, D) result.  NOTE: division is by N, NOT by the mask count -- this
    # intentionally matches torch.mean(neighbor_vectors * masks, dim=-2).
    m = mask_ref[...] * (1.0 / n)
    prod = nbr_ref[...] * m[:, :, None]          # multiply in native dtype
    out_ref[...] = jnp.sum(prod, axis=1, dtype=jnp.float32).astype(out_ref.dtype)


def _choose_row_tile(M, N, D, nbr_dtype, mask_dtype, out_dtype,
                     vmem_budget_bytes=12 * 1024 * 1024):
    """Largest row tile whose padded, double-buffered footprint fits the budget.

    Uses PADDED tile sizes (last two block dims rounded to the (8, 128) vreg
    tile), so D=32 inputs are accounted at their real 128-lane VMEM cost.  The
    default 12 MiB budget stays under every generation's default scoped-VMEM
    limit (v5e 16 MiB, v6e/v7x 32 MiB) with headroom for temporaries.
    """
    nbr_row = _round_up(N, _SUBLANE) * _round_up(D, _LANE) * jnp.dtype(nbr_dtype).itemsize
    mask_row = _round_up(N, _LANE) * jnp.dtype(mask_dtype).itemsize
    out_row = _round_up(D, _LANE) * jnp.dtype(out_dtype).itemsize
    # 2x for Pallas double-buffering, plus ~one nbr-sized temporary for the product.
    per_row = 2 * (nbr_row + mask_row + out_row) + nbr_row
    tm = vmem_budget_bytes // per_row
    tm = max(_SUBLANE, (tm // _SUBLANE) * _SUBLANE)
    tm = min(tm, 2048)                       # stay well clear of v7x's 64 MiB VMEM
    tm = min(tm, _round_up(M, _SUBLANE))     # never exceed the (padded) row count
    return tm


def aggregator_forward(self_vectors, neighbor_vectors, masks, *, tm=None):
    """Aggregator.forward.

    self_vectors:     [B, E, D]      (consumed by the abstract _call; unused here)
    neighbor_vectors: [B, E, N, D]
    masks:            [B, E, N, 1]   (or [B, E, N])
    returns entity_vectors: [B, E, D]
    """
    B, E, N, D = neighbor_vectors.shape
    M = B * E

    nbr = neighbor_vectors.reshape(M, N, D)
    msk = masks.reshape(M, N)                # squeeze the trailing broadcast dim

    out_dtype = neighbor_vectors.dtype
    if tm is None:
        tm = _choose_row_tile(M, N, D, nbr.dtype, msk.dtype, out_dtype)

    grid = (pl.cdiv(M, tm),)                 # partial last tile handled by Pallas

    in_bytes = (nbr.size * jnp.dtype(nbr.dtype).itemsize
                + msk.size * jnp.dtype(msk.dtype).itemsize)
    out_bytes = M * D * jnp.dtype(out_dtype).itemsize
    cost = pl.CostEstimate(flops=2 * M * N * D,
                           transcendentals=0,
                           bytes_accessed=in_bytes + out_bytes)

    entity_vectors = pl.pallas_call(
        masked_mean_kernel,
        out_shape=jax.ShapeDtypeStruct((M, D), out_dtype),
        grid_spec=pltpu.PrefetchScalarGridSpec(
            num_scalar_prefetch=0,
            grid=grid,
            in_specs=[
                pl.BlockSpec((tm, N, D), lambda i: (i, 0, 0)),
                pl.BlockSpec((tm, N), lambda i: (i, 0)),
            ],
            out_specs=pl.BlockSpec((tm, D), lambda i: (i, 0)),
        ),
        compiler_params=pltpu.CompilerParams(
            dimension_semantics=("parallel",)),
        cost_estimate=cost,
    )(nbr, msk)

    entity_vectors = entity_vectors.reshape(B, E, D)

    # TODO(synk): Aggregator._call is abstract in the base class (only concrete
    # subclasses like MeanAggregator/ConcatAggregator define it, typically a
    # weight matmul + activation that should be fused here); the base-class
    # forward hot path (masked mean over the neighbor axis) is what we return.
    del self_vectors
    return entity_vectors


if __name__ == "__main__":
    # Small shapes consistent with the module: batch=2, entities=8,
    # neighbors=8, input_dim=32.
    B, E, N, D = 2, 8, 8, 32
    key = jax.random.PRNGKey(0)
    k1, k2, k3 = jax.random.split(key, 3)

    self_vectors = jax.random.normal(k1, (B, E, D), dtype=jnp.float32)
    neighbor_vectors = jax.random.normal(k2, (B, E, N, D), dtype=jnp.float32)
    masks = (jax.random.uniform(k3, (B, E, N, 1)) > 0.3).astype(jnp.float32)

    out = aggregator_forward(self_vectors, neighbor_vectors, masks)
    out = jax.block_until_ready(out)

    ref = jnp.mean(neighbor_vectors * masks, axis=-2)
    assert out.shape == (B, E, D)
    assert jnp.allclose(out, ref, atol=1e-5, rtol=1e-5)

    # Exercise the non-divisible (cdiv) grid path: M = 24 rows with tm = 16
    # gives 2 grid steps and a partial last tile.
    B2, E2 = 3, 8
    k4, k5, k6 = jax.random.split(jax.random.PRNGKey(1), 3)
    sv2 = jax.random.normal(k4, (B2, E2, D), dtype=jnp.float32)
    nv2 = jax.random.normal(k5, (B2, E2, N, D), dtype=jnp.float32)
    mk2 = (jax.random.uniform(k6, (B2, E2, N, 1)) > 0.5).astype(jnp.float32)
    out2 = jax.block_until_ready(aggregator_forward(sv2, nv2, mk2, tm=16))
    ref2 = jnp.mean(nv2 * mk2, axis=-2)
    assert out2.shape == (B2, E2, D)
    assert jnp.allclose(out2, ref2, atol=1e-5, rtol=1e-5)

    print("KERNEL_OK")
</pallas_src>

<mosaic_0001>
module attributes {stable_mosaic.version = 11 : i64} {
  func.func @masked_mean_kernel(%arg0: i32, %arg1: memref<16x8x32xf32, #tpu.memory_space<vmem>>, %arg2: memref<16x8xf32, #tpu.memory_space<vmem>>, %arg3: memref<16x32xf32, #tpu.memory_space<vmem>>) attributes {dimension_semantics = [#tpu.dimension_semantics<parallel>], iteration_bounds = array<i64: 1>, scalar_prefetch = 0 : i64, scratch_operands = 0 : i64, tpu.core_type = #tpu.core_type<tc>, window_params = [{transform_indices = @transform_0, window_bounds = array<i64: 16, 8, 32>}, {transform_indices = @transform_1, window_bounds = array<i64: 16, 8>}, {transform_indices = @transform_2, window_bounds = array<i64: 16, 32>}]} {
    %c0 = arith.constant 0 : index
    %c0_0 = arith.constant 0 : index
    %0 = vector.load %arg2[%c0, %c0_0] : memref<16x8xf32, #tpu.memory_space<vmem>>, vector<16x8xf32>
    %cst = arith.constant 1.250000e-01 : f32
    %1 = vector.broadcast %cst : f32 to vector<16x8xf32>
    %2 = arith.mulf %0, %1 : vector<16x8xf32>
    %c0_1 = arith.constant 0 : index
    %c0_2 = arith.constant 0 : index
    %c0_3 = arith.constant 0 : index
    %3 = vector.load %arg1[%c0_1, %c0_2, %c0_3] : memref<16x8x32xf32, #tpu.memory_space<vmem>>, vector<16x8x32xf32>
    %4 = vector.shape_cast %2 : vector<16x8xf32> to vector<16x8x1xf32>
    %5 = vector.broadcast %4 : vector<16x8x1xf32> to vector<16x8x32xf32>
    %6 = arith.mulf %3, %5 : vector<16x8x32xf32>
    %cst_4 = arith.constant dense<0.000000e+00> : vector<16x32xf32>
    %7 = vector.multi_reduction <add>, %6, %cst_4 [1] : vector<16x8x32xf32> to vector<16x32xf32>
    %c0_5 = arith.constant 0 : index
    %c0_6 = arith.constant 0 : index
    %8 = vector.load %arg3[%c0_5, %c0_6] : memref<16x32xf32, #tpu.memory_space<vmem>>, vector<16x32xf32>
    tpu.vector_store %arg3[%c0_5, %c0_6], %7 {strides = array<i32>} : memref<16x32xf32, #tpu.memory_space<vmem>>, vector<16x32xf32>,
    return
  }
  func.func @transform_0(%arg0: i32) -> (i32, i32, i32) {
    %c0_i32 = arith.constant 0 : i32
    %c0_i32_0 = arith.constant 0 : i32
    %c0_i32_1 = arith.constant 0 : i32
    return %arg0, %c0_i32, %c0_i32_0 : i32, i32, i32
  }
  func.func @transform_1(%arg0: i32) -> (i32, i32) {
    %c0_i32 = arith.constant 0 : i32
    %c0_i32_0 = arith.constant 0 : i32
    return %arg0, %c0_i32 : i32, i32
  }
  func.func @transform_2(%arg0: i32) -> (i32, i32) {
    %c0_i32 = arith.constant 0 : i32
    %c0_i32_0 = arith.constant 0 : i32
    return %arg0, %c0_i32 : i32, i32
  }
}

</mosaic_0001>

<bundles_post_ra>
// kernel: tpu_custom_call.1
= control target key start
LH: loop header
LB: loop body
LE: loop exit
PB: predicated region body
PF: predicated region fallthrough
CT: control target
= control target key end

     0   :  { %7 = vsyncpa [#allocation3], 0  ;;  %s494_s0 = inlined_call_operand.hbm [shape: f32[16,8,32], index: 0, kind: input, shape index: {}]   ;;  %s495_s1 = inlined_call_operand.vmem [shape: f32[16,8], index: 1, kind: input, shape index: {}]   ;;  %s496_s2 = inlined_call_operand.hbm [shape: f32[16,32], index: 2, kind: output, shape index: {}]  }
   0x1   :  { %8 = vsyncpa [#allocation4], 0  ;;  %s397_s9 = smov [#allocation2]   ;;  %s349_s13 = scalar_lea.hbm %s494_s0, 2048 }
   0x2   :  { %s14_s10 = sshll.u32 %s397_s9, 4  ;;  %p350_p0 = scmp.ne.s32.totalorder %s494_s0, %s349_s13  ;;  %s15_s10 = int_to_ptr.vmem [resolvable:$true] %s14_s10 }
   0x3   :  { %p353_p1 = scmp.lt.u32.totalorder %s349_s13, %s494_s0 }
   0x5   :  { %p355_p2 = pnand %p353_p1, %p350_p0 }
   0x7   :  { %358 = shalt.err (!%p355_p2)
}
   0x8   :  { %s359_s18 = scalar_lea.vmem %s15_s10, 2048  ;;  %p364_p4 = scmp.lt.s32.totalorder %s15_s10, %s15_s10 }
   0x9   :  { %p360_p3 = scmp.ne.s32.totalorder %s15_s10, %s359_s18  ;;  %p365_p5 = scmp.lt.s32.totalorder %s359_s18, %s359_s18 }
   0xb   :  { %p366_p6 = por %p365_p5, %p364_p4 }
   0xd   :  { %p367_p7 = pnand %p366_p6, %p360_p3 }
   0xf   :  { %370 = shalt.err (!%p367_p7)
}
  0x10   :  { %s398_s19 = smov 128   ;;  %s399_s20 = smov 8  }
  0x11   :  { %20 = dma.hbm_to_vmem [thread:$0]  %s494_s0, 2048, %s15_s10, [#allocation3], %s398_s19, %s398_s19, %s399_s20  }
  0x12   :  { %393 = dma.done.wait [#allocation3], 2048  }
  0x13   :  { %394 = vsyncadd [#allocation3], 4294965248  ;;  %v46_v0 = vlaneseq  ;;  %v27_v3 = vld [vmem:[%s495_s1 + $0x8] sm:$0xff]  ;;  %v26_v4 = vld [vmem:[%s495_s1] sm:$0xff]  ;;  %vm174_vm0 = vcmask 261120   ;;  %vm303_vm1 = vcmask 1041409  }
  0x14   :  { %v29_v5 = vmul.f32 0.125, %v27_v3  ;;  %v28_v6 = vmul.f32 0.125, %v26_v4  ;;  %v38_v30 = vld [vmem:[#allocation2 + $0x40] sm:$0xff]  ;;  %v39_v36 = vld [vmem:[#allocation2 + $0x48] sm:$0xff]  ;;  %v40_v48 = vld [vmem:[#allocation2 + $0x50] sm:$0xff]  ;;  %vm305_vm2 = vcmask 1042434  }
  0x15   :  { %v47_v1 = vshrl.u32 %v46_v0, 7  ;;  %v30_v31 = vld [vmem:[#allocation2] sm:$0xff]  ;;  %v31_v37 = vld [vmem:[#allocation2 + $0x8] sm:$0xff]  ;;  %v32_v49 = vld [vmem:[#allocation2 + $0x10] sm:$0xff]  ;;  %vm307_vm3 = vcmask 1043459   ;;  %vm309_vm4 = vcmask 1044484  }
  0x16   :  { %v41_v60 = vld [vmem:[#allocation2 + $0x58] sm:$0xff]  ;;  %vm311_vm5 = vcmask 1045509   ;;  %vm313_vm6 = vcmask 1046534   ;;  %s400_s0 = smov [#allocation5]   ;;  %vm315_vm7 = vcmask 1047559  }
  0x17   :  { %v48_v2 = vsub.s32 0, %v47_v1  ;;  %v55_v7 = vsub.s32 1, %v47_v1  ;;  %v62_v12 = vsub.s32 2, %v47_v1  ;;  %v69_v15 = vsub.s32 3, %v47_v1  ;;  %v33_v61 = vld [vmem:[#allocation2 + $0x18] sm:$0xff]  ;;  %s333_s1 = sshll.u32 %s400_s0, 4  ;;  %s334_s1 = int_to_ptr.vmem [resolvable:$true] %s333_s1 }
  0x18   :  { %v76_v18 = vsub.s32 4, %v47_v1  ;;  %v83_v21 = vsub.s32 5, %v47_v1  ;;  %v90_v24 = vsub.s32 6, %v47_v1  ;;  %v97_v27 = vsub.s32 7, %v47_v1  ;;  %s371_s27 = scalar_lea.vmem %s334_s1, 256  ;;  %p376_p9 = scmp.lt.s32.totalorder %s334_s1, %s334_s1 }
  0x19   :  { %v105_v8 = vrot.slane %v29_v5, %v48_v2  ;;  %v49_v9 = vrot.slane %v28_v6, %v48_v2  ;;  %v112_v10 = vrot.slane %v29_v5, %v55_v7  ;;  %v56_v11 = vrot.slane %v28_v6, %v55_v7  ;;  %p372_p8 = scmp.ne.s32.totalorder %s334_s1, %s371_s27  ;;  %p377_p10 = scmp.lt.s32.totalorder %s371_s27, %s371_s27 }
  0x1a   :  { %v119_v13 = vrot.slane %v29_v5, %v62_v12  ;;  %v63_v14 = vrot.slane %v28_v6, %v62_v12  ;;  %v126_v16 = vrot.slane %v29_v5, %v69_v15  ;;  %v70_v17 = vrot.slane %v28_v6, %v69_v15 }
  0x1b   :  { %107 = vbcast.lane.b32.xlu1 %v105_v8, 256  ;;  %51 = vbcast.lane.b32.xlu0 %v49_v9, 256  ;;  %v133_v19 = vrot.slane %v29_v5, %v76_v18  ;;  %v77_v20 = vrot.slane %v28_v6, %v76_v18  ;;  %v140_v22 = vrot.slane %v29_v5, %v83_v21  ;;  %v42_v8 = vld [vmem:[#allocation2 + $0x60] sm:$0xff]  ;;  %p378_p11 = por %p377_p10, %p376_p9 }
  0x1c   :  { %v84_v23 = vrot.slane %v28_v6, %v83_v21  ;;  %v147_v25 = vrot.slane %v29_v5, %v90_v24  ;;  %v91_v26 = vrot.slane %v28_v6, %v90_v24  ;;  %v154_v28 = vrot.slane %v29_v5, %v97_v27  ;;  %v34_v9 = vld [vmem:[#allocation2 + $0x20] sm:$0xff] }
  0x1d   :  { %v98_v29 = vrot.slane %v28_v6, %v97_v27  ;;  %v35_v27 = vld [vmem:[#allocation2 + $0x28] sm:$0xff]  ;;  %p379_p12 = pnand %p378_p11, %p372_p8 }
  0x1f   :  { %114 = vbcast.lane.b32.xlu1 %v112_v10, 256  ;;  %58 = vbcast.lane.b32.xlu0 %v56_v11, 256 }
  0x23   :  { %121 = vbcast.lane.b32.xlu1 %v119_v13, 256  ;;  %65 = vbcast.lane.b32.xlu0 %v63_v14, 256 }
  0x27   :  { %128 = vbcast.lane.b32.xlu1 %v126_v16, 256  ;;  %72 = vbcast.lane.b32.xlu0 %v70_v17, 256 }
  0x2b   :  { %135 = vbcast.lane.b32.xlu1 %v133_v19, 256  ;;  %79 = vbcast.lane.b32.xlu0 %v77_v20, 256 }
  0x2f   :  { %142 = vbcast.lane.b32.xlu1 %v140_v22, 256  ;;  %86 = vbcast.lane.b32.xlu0 %v84_v23, 256 }
  0x33   :  { %149 = vbcast.lane.b32.xlu1 %v147_v25, 256  ;;  %93 = vbcast.lane.b32.xlu0 %v91_v26, 256  ;;  %v43_v26 = vld [vmem:[#allocation2 + $0x68] sm:$0xff] }
  0x37   :  { %156 = vbcast.lane.b32.xlu1 %v154_v28, 256  ;;  %100 = vbcast.lane.b32.xlu0 %v98_v29, 256 }
  0x8d   :  { %v108_v32 = vpop.permute.xlu1 %107  ;;  %v52_v33 = vpop.permute.xlu0 %51 }
  0x8e   :  { %v166_v34 = vmul.f32 %v108_v32, %v38_v30  ;;  %v158_v35 = vmul.f32 %v52_v33, %v30_v31 }
  0x90   :  { %v231_v38 = vsel %vm174_vm0, %v166_v34, 0.0  ;;  %v175_v39 = vsel %vm174_vm0, %v158_v35, 0.0 }
  0x91   :  { %v232_v40 = vrot.slane %v231_v38, 4  ;;  %v176_v41 = vrot.slane %v175_v39, 4  ;;  %v115_v42 = vpop.permute.xlu1 %114  ;;  %v59_v43 = vpop.permute.xlu0 %58 }
  0x92   :  { %v167_v44 = vmul.f32 %v115_v42, %v39_v36  ;;  %v159_v45 = vmul.f32 %v59_v43, %v31_v37 }
  0x93   :  { %v233_v50 = vadd.f32 %v232_v40, %v231_v38  ;;  %v177_v51 = vadd.f32 %v176_v41, %v175_v39 }
  0x94   :  { %v238_v46 = vsel %vm174_vm0, %v167_v44, 0.0  ;;  %v182_v47 = vsel %vm174_vm0, %v159_v45, 0.0 }
  0x95   :  { %v239_v52 = vrot.slane %v238_v46, 4  ;;  %v183_v53 = vrot.slane %v182_v47, 4  ;;  %v122_v54 = vpop.permute.xlu1 %121  ;;  %v66_v55 = vpop.permute.xlu0 %65  ;;  %v234_v62 = vrot.slane %v233_v50, 2  ;;  %v178_v63 = vrot.slane %v177_v51, 2 }
  0x96   :  { %v168_v58 = vmul.f32 %v122_v54, %v40_v48  ;;  %v160_v59 = vmul.f32 %v66_v55, %v32_v49  ;;  %v36_v48 = vld [vmem:[#allocation2 + $0x30] sm:$0xff] }
  0x97   :  { %v240_v56 = vadd.f32 %v239_v52, %v238_v46  ;;  %v184_v57 = vadd.f32 %v183_v53, %v182_v47  ;;  %v235_v10 = vadd.f32 %v234_v62, %v233_v50  ;;  %v179_v11 = vadd.f32 %v178_v63, %v177_v51  ;;  %v44_v46 = vld [vmem:[#allocation2 + $0x70] sm:$0xff] }
  0x98   :  { %v245_v6 = vsel %vm174_vm0, %v168_v58, 0.0  ;;  %v189_v7 = vsel %vm174_vm0, %v160_v59, 0.0 }
  0x99   :  { %v129_v0 = vpop.permute.xlu1 %128  ;;  %v73_v1 = vpop.permute.xlu0 %72  ;;  %v241_v4 = vrot.slane %v240_v56, 2  ;;  %v185_v5 = vrot.slane %v184_v57, 2  ;;  %v246_v16 = vrot.slane %v245_v6, 4  ;;  %v190_v17 = vrot.slane %v189_v7, 4 }
  0x9a   :  { %v169_v2 = vmul.f32 %v129_v0, %v41_v60  ;;  %v161_v3 = vmul.f32 %v73_v1, %v33_v61  ;;  %v236_v28 = vrot.slane %v235_v10, 1  ;;  %v180_v29 = vrot.slane %v179_v11, 1 }
  0x9b   :  { %v242_v20 = vadd.f32 %v241_v4, %v240_v56  ;;  %v186_v21 = vadd.f32 %v185_v5, %v184_v57  ;;  %v247_v32 = vadd.f32 %v246_v16, %v245_v6  ;;  %v191_v33 = vadd.f32 %v190_v17, %v189_v7  ;;  %v37_v4 = vld [vmem:[#allocation2 + $0x38] sm:$0xff] }
  0x9c   :  { %v252_v12 = vsel %vm174_vm0, %v169_v2, 0.0  ;;  %v196_v13 = vsel %vm174_vm0, %v161_v3, 0.0  ;;  %v449_v50 = vadd.f32 %v236_v28, %v235_v10  ;;  %v451_v51 = vadd.f32 %v180_v29, %v179_v11  ;;  %v45_v2 = vld [vmem:[#allocation2 + $0x78] sm:$0xff] }
  0x9d   :  { %v136_v14 = vpop.permute.xlu1 %135  ;;  %v80_v15 = vpop.permute.xlu0 %79  ;;  %v253_v22 = vrot.slane %v252_v12, 4  ;;  %v197_v23 = vrot.slane %v196_v13, 4  ;;  %v243_v36 = vrot.slane %v242_v20, 1  ;;  %v187_v37 = vrot.slane %v186_v21, 1 }
  0x9e   :  { %v170_v18 = vmul.f32 %v136_v14, %v42_v8  ;;  %v162_v19 = vmul.f32 %v80_v15, %v34_v9  ;;  %v248_v52 = vrot.slane %v247_v32, 2  ;;  %v192_v53 = vrot.slane %v191_v33, 2 }
  0x9f   :  { %v254_v40 = vadd.f32 %v253_v22, %v252_v12  ;;  %v198_v41 = vadd.f32 %v197_v23, %v196_v13  ;;  %v453_v54 = vadd.f32 %v243_v36, %v242_v20  ;;  %v455_v55 = vadd.f32 %v187_v37, %v186_v21 }
  0xa0   :  { %v259_v24 = vsel %vm174_vm0, %v170_v18, 0.0  ;;  %v203_v25 = vsel %vm174_vm0, %v162_v19, 0.0  ;;  %v249_v6 = vadd.f32 %v248_v52, %v247_v32  ;;  %v193_v7 = vadd.f32 %v192_v53, %v191_v33 }
  0xa1   :  { %v143_v30 = vpop.permute.xlu1 %142  ;;  %v87_v31 = vpop.permute.xlu0 %86  ;;  %v260_v34 = vrot.slane %v259_v24, 4  ;;  %v204_v35 = vrot.slane %v203_v25, 4  ;;  %v255_v58 = vrot.slane %v254_v40, 2  ;;  %v199_v59 = vrot.slane %v198_v41, 2 }
  0xa2   :  { %v171_v38 = vmul.f32 %v143_v30, %v43_v26  ;;  %v163_v39 = vmul.f32 %v87_v31, %v35_v27  ;;  %v250_v26 = vrot.slane %v249_v6, 1  ;;  %v194_v27 = vrot.slane %v193_v7, 1 }
  0xa3   :  { %v261_v42 = vadd.f32 %v260_v34, %v259_v24  ;;  %v205_v43 = vadd.f32 %v204_v35, %v203_v25  ;;  %v256_v14 = vadd.f32 %v255_v58, %v254_v40  ;;  %v200_v15 = vadd.f32 %v199_v59, %v198_v41 }
  0xa4   :  { %v266_v44 = vsel %vm174_vm0, %v171_v38, 0.0  ;;  %v210_v45 = vsel %vm174_vm0, %v163_v39, 0.0  ;;  %v317_v52 = vsel %vm303_vm1, %v453_v54, %v449_v50  ;;  %v304_v53 = vsel %vm303_vm1, %v455_v55, %v451_v51 }
  0xa5   :  { %v150_v47 = vpop.permute.xlu1 %149  ;;  %v94_v49 = vpop.permute.xlu0 %93  ;;  %v267_v56 = vrot.slane %v266_v44, 4  ;;  %v211_v57 = vrot.slane %v210_v45, 4  ;;  %v262_v62 = vrot.slane %v261_v42, 2  ;;  %v206_v63 = vrot.slane %v205_v43, 2 }
  0xa6   :  { %v172_v60 = vmul.f32 %v150_v47, %v44_v46  ;;  %v164_v61 = vmul.f32 %v94_v49, %v36_v48  ;;  %v257_v30 = vrot.slane %v256_v14, 1  ;;  %v201_v31 = vrot.slane %v200_v15, 1 }
  0xa7   :  { %v268_v0 = vadd.f32 %v267_v56, %v266_v44  ;;  %v212_v1 = vadd.f32 %v211_v57, %v210_v45  ;;  %v263_v18 = vadd.f32 %v262_v62, %v261_v42  ;;  %v207_v19 = vadd.f32 %v206_v63, %v205_v43 }
  0xa8   :  { %v273_v8 = vsel %vm174_vm0, %v172_v60, 0.0  ;;  %v217_v9 = vsel %vm174_vm0, %v164_v61, 0.0  ;;  %v251_v42 = vadd.f32 %v250_v26, %v249_v6  ;;  %v195_v43 = vadd.f32 %v194_v27, %v193_v7 }
  0xa9   :  { %v157_v3 = vpop.permute.xlu1 %156  ;;  %v101_v5 = vpop.permute.xlu0 %100  ;;  %v269_v10 = vrot.slane %v268_v0, 2  ;;  %v213_v11 = vrot.slane %v212_v1, 2  ;;  %v274_v12 = vrot.slane %v273_v8, 4  ;;  %v218_v13 = vrot.slane %v217_v9, 4 }
  0xaa   :  { %v173_v16 = vmul.f32 %v157_v3, %v45_v2  ;;  %v165_v17 = vmul.f32 %v101_v5, %v37_v4  ;;  %v264_v34 = vrot.slane %v263_v18, 1  ;;  %v208_v35 = vrot.slane %v207_v19, 1 }
  0xab   :  { %v275_v20 = vadd.f32 %v274_v12, %v273_v8  ;;  %v219_v21 = vadd.f32 %v218_v13, %v217_v9  ;;  %v270_v22 = vadd.f32 %v269_v10, %v268_v0  ;;  %v214_v23 = vadd.f32 %v213_v11, %v212_v1 }
  0xac   :  { %v280_v24 = vsel %vm174_vm0, %v173_v16, 0.0  ;;  %v224_v25 = vsel %vm174_vm0, %v165_v17, 0.0  ;;  %v258_v46 = vadd.f32 %v257_v30, %v256_v14  ;;  %v202_v47 = vadd.f32 %v201_v31, %v200_v15 }
  0xad   :  { %v276_v28 = vrot.slane %v275_v20, 2  ;;  %v220_v29 = vrot.slane %v219_v21, 2  ;;  %v281_v32 = vrot.slane %v280_v24, 4  ;;  %v225_v33 = vrot.slane %v224_v25, 4 }
  0xae   :  { %v271_v38 = vrot.slane %v270_v22, 1  ;;  %v215_v39 = vrot.slane %v214_v23, 1  ;;  %v265_v56 = vadd.f32 %v264_v34, %v263_v18  ;;  %v209_v57 = vadd.f32 %v208_v35, %v207_v19 }
  0xaf   :  { %v277_v36 = vadd.f32 %v276_v28, %v275_v20  ;;  %v221_v37 = vadd.f32 %v220_v29, %v219_v21  ;;  %v282_v40 = vadd.f32 %v281_v32, %v280_v24  ;;  %v226_v41 = vadd.f32 %v225_v33, %v224_v25 }
  0xb0   :  { %v272_v58 = vadd.f32 %v271_v38, %v270_v22  ;;  %v216_v59 = vadd.f32 %v215_v39, %v214_v23  ;;  %v318_v62 = vsel %vm305_vm2, %v251_v42, %v317_v52  ;;  %v306_v63 = vsel %vm305_vm2, %v195_v43, %v304_v53 }
  0xb1   :  { %v278_v44 = vrot.slane %v277_v36, 1  ;;  %v222_v45 = vrot.slane %v221_v37, 1  ;;  %v283_v48 = vrot.slane %v282_v40, 2  ;;  %v227_v49 = vrot.slane %v226_v41, 2 }
  0xb2   :  { %v319_v2 = vsel %vm307_vm3, %v258_v46, %v318_v62  ;;  %v308_v50 = vsel %vm307_vm3, %v202_v47, %v306_v63 }
  0xb3   :  { %v284_v60 = vadd.f32 %v283_v48, %v282_v40  ;;  %v228_v61 = vadd.f32 %v227_v49, %v226_v41  ;;  %v279_v0 = vadd.f32 %v278_v44, %v277_v36  ;;  %v223_v1 = vadd.f32 %v222_v45, %v221_v37 }
  0xb4   :  { %v320_v51 = vsel %vm309_vm4, %v265_v56, %v319_v2  ;;  %v310_v55 = vsel %vm309_vm4, %v209_v57, %v308_v50 }
  0xb5   :  { %v285_v54 = vrot.slane %v284_v60, 1  ;;  %v229_v3 = vrot.slane %v228_v61, 1  ;;  %v312_v6 = vsel %vm311_vm5, %v216_v59, %v310_v55  ;;  %v321_v7 = vsel %vm311_vm5, %v272_v58, %v320_v51 }
  0xb6   :  { %v314_v8 = vsel %vm313_vm6, %v223_v1, %v312_v6  ;;  %v322_v9 = vsel %vm313_vm6, %v279_v0, %v321_v7 }
  0xb7   :  { %v286_v4 = vadd.f32 %v285_v54, %v284_v60  ;;  %v230_v5 = vadd.f32 %v229_v3, %v228_v61 }
  0xb9   :  { %v316_v10 = vsel %vm315_vm7, %v230_v5, %v314_v8  ;;  %v323_v11 = vsel %vm315_vm7, %v286_v4, %v322_v9 }
  0xba   :  { %326 = vst.msk [vmem:[#allocation5] sm:$0xff] %vm174_vm0, %v316_v10  ;;  %327 = vst.msk [vmem:[#allocation5 + $0x8] sm:$0xff] %vm174_vm0, %v323_v11 }
  0xbb   :  { %382 = shalt.err (!%p379_p12)
}
  0xbc   :  { %s383_s30 = scalar_lea.hbm %s496_s2, 256 }
  0xbd   :  { %p384_p13 = scmp.ne.s32.totalorder %s496_s2, %s383_s30  ;;  %p387_p0 = scmp.lt.u32.totalorder %s383_s30, %s496_s2 }
  0xbf   :  { %p389_p1 = pnand %p387_p0, %p384_p13 }
  0xc1   :  { %392 = shalt.err (!%p389_p1)
}
  0xc2   :  { %339 = dma.vmem_to_hbm [thread:$0]  %s334_s1, 256, %s496_s2, [#allocation4], %s398_s19, %s398_s19, %s399_s20  }
  0xc3   :  { %395 = dma.done.wait [#allocation4], 256  }
  0xc4   :  { %396 = vsyncadd [#allocation4], 4294967040 }
  0xc5   :  { %343 = vsyncpa [#allocation3], 1 }
  0xc6   :  { %344 = vsyncpa [#allocation4], 1 }

</bundles_post_ra>
